<compile_context>
chip_gen: v7x
topology: tpu7x:2x2x1
jax: 0.10.0
libtpu: 0.0.40
codegen_flags: <defaults>
</compile_context>

<pallas_src>
import jax
import jax.numpy as jnp
from jax.experimental import pallas as pl
from jax.experimental.pallas import tpu as pltpu

_LANE = 128


def _soft_gating_kernel(x_ref, w_ref, o_ref):
    # x_ref: (r_blk, hw_blk); w_ref: (r_blk, 1) -> lane-only broadcast.
    o_ref[...] = (x_ref[...] * w_ref[...]).astype(o_ref.dtype)


def _soft_gating_bias_kernel(x_ref, w_ref, b_ref, o_ref):
    o_ref[...] = (x_ref[...] * w_ref[...] + b_ref[...]).astype(o_ref.dtype)


def _choose_block(R, HW, itemsize, target_bytes):
    """Pick an (8k,128k)-legal (r_blk, hw_blk) tile of roughly target_bytes."""
    sub = max(8, 32 // itemsize)                  # dtype-aware sublane packing
    target_elems = max(sub * _LANE, target_bytes // itemsize)

    # Lane (flattened-spatial) block: multiple of 128 capped by the budget,
    # or the full dim when it is already small.  No full-dim fallback for
    # large ragged dims -- the masked last block handles any remainder.
    if HW <= _LANE:
        hw_blk = HW
    else:
        cap = max(_LANE, (target_elems // sub) // _LANE * _LANE)
        hw_blk = HW if cap >= HW else cap

    # Row (= batch*channel) block: multiple of `sub` filling the remaining
    # budget, or the full dim when small.
    if R <= sub:
        r_blk = R
    else:
        want = max(sub, (target_elems // hw_blk) // sub * sub)
        r_blk = R if want >= R else want

    # v7x has 2 TensorCores: if everything collapsed into a single grid step
    # but the tensor is not tiny, split one axis so the "parallel" grid has
    # >=2 steps to shard across cores.
    if r_blk >= R and hw_blk >= HW and R * HW * itemsize > (1 << 19):
        if R >= 2 * sub:
            half = -(-((R + 1) // 2) // sub) * sub        # round up to `sub`
            if half < R:
                r_blk = half
        elif HW >= 2 * _LANE:
            hw_blk = max(_LANE, (HW // 2) // _LANE * _LANE)

    return r_blk, hw_blk


def soft_gating(x, weight, bias=None, *, block_target_bytes=4 << 20):
    """out = weight * x (+ bias); weight/bias shaped (1, C, 1, ..., 1)."""
    B, C = x.shape[0], x.shape[1]
    spatial = x.shape[2:]
    HW = 1
    for s in spatial:
        HW *= int(s)

    assert weight.shape == (1, C) + (1,) * len(spatial)
    if bias is not None:
        assert bias.shape == weight.shape

    R = B * C
    itemsize = x.dtype.itemsize

    # Lane-dense 2-D presentation with batch folded into the row axis.
    x2 = x.reshape(R, HW)
    w2 = jnp.broadcast_to(weight.reshape(1, C), (B, C)).reshape(R, 1)

    r_blk, hw_blk = _choose_block(R, HW, itemsize, block_target_bytes)
    grid = (pl.cdiv(R, r_blk), pl.cdiv(HW, hw_blk))

    x_spec = pl.BlockSpec((r_blk, hw_blk), lambda ri, hi: (ri, hi))
    # Per-row gain column: constant across the inner hw axis -> the block is
    # revisited (no per-step re-DMA) while spatial tiles stream through.
    w_spec = pl.BlockSpec((r_blk, 1), lambda ri, hi: (ri, 0))
    out_spec = pl.BlockSpec((r_blk, hw_blk), lambda ri, hi: (ri, hi))

    if bias is not None:
        b2 = jnp.broadcast_to(bias.reshape(1, C), (B, C)).reshape(R, 1)
        kernel = _soft_gating_bias_kernel
        operands = (x2, w2, b2)
        in_specs = [x_spec, w_spec, w_spec]
        flops = 2 * R * HW
        param_bytes = w2.size * w2.dtype.itemsize + b2.size * b2.dtype.itemsize
    else:
        kernel = _soft_gating_kernel
        operands = (x2, w2)
        in_specs = [x_spec, w_spec]
        flops = R * HW
        param_bytes = w2.size * w2.dtype.itemsize

    out2 = pl.pallas_call(
        kernel,
        out_shape=jax.ShapeDtypeStruct((R, HW), x.dtype),
        grid_spec=pltpu.PrefetchScalarGridSpec(
            num_scalar_prefetch=0,
            grid=grid,
            in_specs=in_specs,
            out_specs=out_spec,
        ),
        compiler_params=pltpu.CompilerParams(
            # Pure elementwise: every grid axis is independent / shardable.
            dimension_semantics=("parallel", "parallel"),
            # = v6e/v7x scoped default; raises v5e's 16 MiB default so the
            # double-buffered in+out tiles always fit (128 MiB physical there).
            vmem_limit_bytes=32 << 20,
        ),
        cost_estimate=pl.CostEstimate(
            flops=flops,
            transcendentals=0,
            bytes_accessed=2 * R * HW * itemsize + param_bytes,
        ),
    )(*operands)

    return out2.reshape(x.shape)


if __name__ == "__main__":
    B, C, H, W = 2, 4, 16, 16
    n_dim = 2

    key = jax.random.PRNGKey(0)
    kx, kw, kb, ky = jax.random.split(key, 4)

    x = jax.random.normal(kx, (B, C, H, W), dtype=jnp.float32)

    # PyTorch init is torch.ones(1, C, 1, 1); perturb so per-channel scaling
    # is actually exercised.
    weight = jnp.ones((1, C) + (1,) * n_dim, dtype=jnp.float32) \
        + 0.1 * jax.random.normal(kw, (1, C, 1, 1), dtype=jnp.float32)
    bias = jnp.ones((1, C) + (1,) * n_dim, dtype=jnp.float32) \
        + 0.1 * jax.random.normal(kb, (1, C, 1, 1), dtype=jnp.float32)

    # bias=False path (module default)
    out_nobias = jax.block_until_ready(soft_gating(x, weight, bias=None))
    ref_nobias = weight * x
    assert out_nobias.shape == x.shape
    assert out_nobias.dtype == x.dtype
    assert jnp.allclose(out_nobias, ref_nobias, atol=1e-6, rtol=1e-6)

    # bias=True path
    out_bias = jax.block_until_ready(soft_gating(x, weight, bias=bias))
    ref_bias = weight * x + bias
    assert jnp.allclose(out_bias, ref_bias, atol=1e-6, rtol=1e-6)

    # Ragged shape + tiny block target: forces a multi-step grid with masked
    # (ragged) last blocks along both the row and lane axes, exercising the
    # new block-selection path (no full-dim fallback).
    x_r = jax.random.normal(ky, (2, 5, 33, 37), dtype=jnp.float32)
    w_r = 1.0 + 0.1 * jax.random.normal(kw, (1, 5, 1, 1), dtype=jnp.float32)
    out_r = jax.block_until_ready(
        soft_gating(x_r, w_r, bias=None, block_target_bytes=16 << 10))
    assert out_r.shape == x_r.shape
    assert jnp.allclose(out_r, w_r * x_r, atol=1e-6, rtol=1e-6)

    print("KERNEL_OK")
</pallas_src>

<mosaic_0001>
module attributes {stable_mosaic.version = 11 : i64} {
  func.func @_soft_gating_kernel(%arg0: i32, %arg1: i32, %arg2: memref<8x256xf32, #tpu.memory_space<vmem>>, %arg3: memref<8x1xf32, #tpu.memory_space<vmem>>, %arg4: memref<8x256xf32, #tpu.memory_space<vmem>>) attributes {dimension_semantics = [#tpu.dimension_semantics<parallel>, #tpu.dimension_semantics<parallel>], iteration_bounds = array<i64: 1, 1>, scalar_prefetch = 0 : i64, scratch_operands = 0 : i64, tpu.core_type = #tpu.core_type<tc>, window_params = [{transform_indices = @transform_0, window_bounds = array<i64: 8, 256>}, {transform_indices = @transform_1, window_bounds = array<i64: 8, 1>}, {transform_indices = @transform_2, window_bounds = array<i64: 8, 256>}]} {
    %c0 = arith.constant 0 : index
    %c0_0 = arith.constant 0 : index
    %0 = vector.load %arg2[%c0, %c0_0] : memref<8x256xf32, #tpu.memory_space<vmem>>, vector<8x256xf32>
    %c0_1 = arith.constant 0 : index
    %c0_2 = arith.constant 0 : index
    %1 = vector.load %arg3[%c0_1, %c0_2] : memref<8x1xf32, #tpu.memory_space<vmem>>, vector<8x1xf32>
    %2 = vector.broadcast %1 : vector<8x1xf32> to vector<8x256xf32>
    %3 = arith.mulf %0, %2 : vector<8x256xf32>
    %c0_3 = arith.constant 0 : index
    %c0_4 = arith.constant 0 : index
    %4 = vector.load %arg4[%c0_3, %c0_4] : memref<8x256xf32, #tpu.memory_space<vmem>>, vector<8x256xf32>
    tpu.vector_store %arg4[%c0_3, %c0_4], %3 {strides = array<i32>} : memref<8x256xf32, #tpu.memory_space<vmem>>, vector<8x256xf32>,
    return
  }
  func.func @transform_0(%arg0: i32, %arg1: i32) -> (i32, i32) {
    %c0_i32 = arith.constant 0 : i32
    return %arg0, %arg1 : i32, i32
  }
  func.func @transform_1(%arg0: i32, %arg1: i32) -> (i32, i32) {
    %c0_i32 = arith.constant 0 : i32
    %c0_i32_0 = arith.constant 0 : i32
    return %arg0, %c0_i32 : i32, i32
  }
  func.func @transform_2(%arg0: i32, %arg1: i32) -> (i32, i32) {
    %c0_i32 = arith.constant 0 : i32
    return %arg0, %arg1 : i32, i32
  }
}

</mosaic_0001>

<bundles_post_ra>
// kernel: tpu_custom_call.1
= control target key start
LH: loop header
LB: loop body
LE: loop exit
PB: predicated region body
PF: predicated region fallthrough
CT: control target
= control target key end

     0   :  { %7 = vsyncpa [#allocation3], 0  ;;  %s148_s0 = inlined_call_operand.hbm [shape: f32[8,256], index: 0, kind: input, shape index: {}]   ;;  %s149_s1 = inlined_call_operand.vmem [shape: f32[8,1], index: 1, kind: input, shape index: {}]   ;;  %s150_s2 = inlined_call_operand.hbm [shape: f32[8,256], index: 2, kind: output, shape index: {}]  }
   0x1   :  { %8 = vsyncpa [#allocation4], 0  ;;  %s103_s9 = smov [#allocation2]   ;;  %s55_s13 = scalar_lea.hbm %s148_s0, 256 }
   0x2   :  { %s15_s10 = sshll.u32 %s103_s9, 4  ;;  %p56_p0 = scmp.ne.s32.totalorder %s148_s0, %s55_s13  ;;  %s16_s10 = int_to_ptr.vmem [resolvable:$true] %s15_s10 }
   0x3   :  { %p59_p1 = scmp.lt.u32.totalorder %s55_s13, %s148_s0 }
   0x5   :  { %p61_p2 = pnand %p59_p1, %p56_p0 }
   0x7   :  { %64 = shalt.err (!%p61_p2)
}
   0x8   :  { %s65_s18 = scalar_lea.vmem %s16_s10, 256  ;;  %p70_p4 = scmp.lt.s32.totalorder %s16_s10, %s16_s10 }
   0x9   :  { %p66_p3 = scmp.ne.s32.totalorder %s16_s10, %s65_s18  ;;  %p71_p5 = scmp.lt.s32.totalorder %s65_s18, %s65_s18 }
   0xb   :  { %p72_p6 = por %p71_p5, %p70_p4 }
   0xd   :  { %p73_p7 = pnand %p72_p6, %p66_p3 }
   0xf   :  { %76 = shalt.err (!%p73_p7)
}
  0x10   :  { %18 = dma.hbm_to_vmem [thread:$0]  %s148_s0, 256, %s16_s10, [#allocation3]  }
  0x11   :  { %99 = dma.done.wait [#allocation3], 256  }
  0x12   :  { %100 = vsyncadd [#allocation3], 4294967040  ;;  %v104_v0 = vmov 0   ;;  %v26_v1 = vld [vmem:[%s149_s1] sm:$0xff]  ;;  %v25_v3 = vld [vmem:[#allocation2 + $0x8] sm:$0xff]  ;;  %s105_s23 = smov [#allocation5]  }
  0x13   :  { %54 = vset.pattern.permute.xlu0 %v104_v0  ;;  %v24_v2 = vld [vmem:[#allocation2] sm:$0xff]  ;;  %s42_s24 = sshll.u32 %s105_s23, 4  ;;  %s43_s24 = int_to_ptr.vmem [resolvable:$true] %s42_s24 }
  0x14   :  { %29 = vperm.xlu0 %54, %v26_v1   ;;  %s77_s0 = scalar_lea.vmem %s43_s24, 256  ;;  %p82_p9 = scmp.lt.s32.totalorder %s43_s24, %s43_s24 }
  0x15   :  { %p78_p8 = scmp.ne.s32.totalorder %s43_s24, %s77_s0  ;;  %p83_p10 = scmp.lt.s32.totalorder %s77_s0, %s77_s0 }
  0x17   :  { %p84_p11 = por %p83_p10, %p82_p9 }
  0x19   :  { %p85_p12 = pnand %p84_p11, %p78_p8 }
  0x93   :  { %v30_v4 = vpop.permute.xlu0 %29 }
  0x94   :  { %v32_v5 = vmul.f32 %v30_v4, %v24_v2  ;;  %v33_v6 = vmul.f32 %v30_v4, %v25_v3 }
  0x96   :  { %34 = vst [vmem:[#allocation5] sm:$0xff] %v32_v5  ;;  %35 = vst [vmem:[#allocation5 + $0x8] sm:$0xff] %v33_v6 }
  0x97   :  { %88 = shalt.err (!%p85_p12)
}
  0x98   :  { %s89_s26 = scalar_lea.hbm %s150_s2, 256 }
  0x99   :  { %p90_p13 = scmp.ne.s32.totalorder %s150_s2, %s89_s26  ;;  %p93_p0 = scmp.lt.u32.totalorder %s89_s26, %s150_s2 }
  0x9b   :  { %p95_p1 = pnand %p93_p0, %p90_p13 }
  0x9d   :  { %98 = shalt.err (!%p95_p1)
}
  0x9e   :  { %45 = dma.vmem_to_hbm [thread:$0]  %s43_s24, 256, %s150_s2, [#allocation4]  }
  0x9f   :  { %101 = dma.done.wait [#allocation4], 256  }
  0xa0   :  { %102 = vsyncadd [#allocation4], 4294967040 }
  0xa1   :  { %49 = vsyncpa [#allocation3], 1 }
  0xa2   :  { %50 = vsyncpa [#allocation4], 1 }

</bundles_post_ra>
